<compile_context>
chip_gen: v7x
topology: tpu7x:2x2x1
jax: 0.10.0
libtpu: 0.0.40
codegen_flags: <defaults>
</compile_context>

<pallas_src>
import functools

import jax
import jax.numpy as jnp
from jax import lax
from jax.experimental import pallas as pl
from jax.experimental.pallas import tpu as pltpu


def _round_up(a, m):
    return (a + m - 1) // m * m


# ----------------------------------------------------------------------------
# Pallas kernel: fused Conv3x3 -> BN -> ReLU -> Conv3x3 -> BN -> ReLU over the
# Nb images of one grid block.  Layout is channels-first / lane-dense: every
# image is a (C, Lseg) slab whose lane axis holds the flattened zero-padded
# spatial grid (H+2)*(W+2), padded up to a multiple of 128.
#
# Correctness of the roll-based im2col relies on three invariants:
#   (1) the input carries a 1-px zero halo (wrapper jnp.pad),
#   (2) interior taps never read the lane tail [Lp, Lseg),
#   (3) y1 is multiplied by the interior mask before conv2's rolls,
# so interior outputs only ever read valid values or exact zeros even though
# pltpu.roll is cyclic over the slab.  Do not drop any of these.
# ----------------------------------------------------------------------------
def _conv_block_kernel(x_ref, mask_ref, w1_ref, sh1_ref, w2_ref, sh2_ref,
                       out_ref, *, Nb, Wp):
    # x_ref   : (Nb, C1p, Lseg) compute_dtype   zero-padded images
    # mask_ref: (1, Lseg)       f32             1.0 at interior positions
    # w1_ref  : (C2p, 9*C1p)    compute_dtype   BN1 scale pre-folded
    # w2_ref  : (C2p, 9*C2p)    compute_dtype   BN2 scale pre-folded
    # sh*_ref : (C2p, 1)        f32             folded BatchNorm shifts
    # out_ref : (Nb, C2p, Lseg) f32
    cdt = w1_ref.dtype

    def im2col(inp):
        # 9 XLU lane-rolls -> (9*Cin, L) patch matrix, kept in compute_dtype
        # (cast happens BEFORE the rolls, never after the concat).
        L = inp.shape[-1]
        taps = []
        for dy in range(3):
            for dx in range(3):
                s = (dy - 1) * Wp + (dx - 1)      # flat offset of this tap
                taps.append(inp if s == 0 else
                            pltpu.roll(inp, shift=(-s) % L, axis=1))
        return jnp.concatenate(taps, axis=0)

    @pl.loop(0, Nb)      # scf.for bounds live ranges to one image's buffers
    def _(n):
        mask = mask_ref[...]                      # tiny; cheap per-iter loads
        w1 = w1_ref[...]
        w2 = w2_ref[...]
        sh1 = sh1_ref[...]
        sh2 = sh2_ref[...]

        x = x_ref[n]                                          # (C1p, Lseg) cdt
        a1 = jnp.dot(w1, im2col(x), preferred_element_type=jnp.float32)
        y1 = jnp.maximum(a1 + sh1, 0.0) * mask                # f32, zero halo/tail
        a2 = jnp.dot(w2, im2col(y1.astype(cdt)),
                     preferred_element_type=jnp.float32)
        # Full-width, lane-dense store (Lseg is a multiple of 128).
        out_ref[n] = jnp.maximum(a2 + sh2, 0.0).astype(out_ref.dtype)


def conv_block_pallas(x_flat, mask, w1, sh1, w2, sh2, *, Nb, Wp,
                      vmem_limit_bytes):
    """x_flat: (Npad, C1p, Lseg) compute_dtype -> (Npad, C2p, Lseg) f32."""
    Npad, C1p, Lseg = x_flat.shape
    C2p = w1.shape[0]
    Ng = Npad // Nb
    kernel = functools.partial(_conv_block_kernel, Nb=Nb, Wp=Wp)
    return pl.pallas_call(
        kernel,
        out_shape=jax.ShapeDtypeStruct((Npad, C2p, Lseg), jnp.float32),
        grid=(Ng,),
        in_specs=[
            pl.BlockSpec((Nb, C1p, Lseg), lambda g: (g, 0, 0)),
            pl.BlockSpec((1, Lseg), lambda g: (0, 0)),
            pl.BlockSpec((C2p, 9 * C1p), lambda g: (0, 0)),
            pl.BlockSpec((C2p, 1), lambda g: (0, 0)),
            pl.BlockSpec((C2p, 9 * C2p), lambda g: (0, 0)),
            pl.BlockSpec((C2p, 1), lambda g: (0, 0)),
        ],
        out_specs=pl.BlockSpec((Nb, C2p, Lseg), lambda g: (g, 0, 0)),
        compiler_params=pltpu.CompilerParams(
            dimension_semantics=("parallel",),
            vmem_limit_bytes=vmem_limit_bytes),
    )(x_flat, mask, w1, sh1, w2, sh2)


# ----------------------------------------------------------------------------
# Generation-aware VMEM budgeting & batch-tile selection
# ----------------------------------------------------------------------------
def _vmem_limits():
    phys = 128 * 1024 * 1024
    try:
        phys = int(getattr(pltpu.get_tpu_info(), "vmem_capacity_bytes", phys))
    except Exception:
        pass
    # ~3/4 of physical, capped at 96 MiB (=> ~48 MiB on v7x's 64 MiB/TC).
    limit = min(phys * 3 // 4, 96 * 1024 * 1024)
    budget = limit // 2          # batch-tile sizing budget
    return limit, budget


def _pick_batch_tile(N, Lseg, c1p, c2p, in_itemsize, budget_bytes):
    # One image's inner working set (pl.loop bounds it to a single image):
    # im2col taps + concat for both convs (compute_dtype) + f32 intermediates.
    inner = Lseg * (2 * 9 * c1p * in_itemsize
                    + 2 * 9 * c2p * in_itemsize
                    + 6 * c2p * 4
                    + 2 * c1p * in_itemsize)
    # Per-image I/O, double-buffered by the BlockSpec pipeline.
    per_image_io = Lseg * (2 * c1p * in_itemsize + 2 * c2p * 4)
    avail = max(budget_bytes - inner, per_image_io)
    Nb = max(1, min(N, avail // per_image_io))
    # Keep >= 2 grid steps when possible so the "parallel" axis can feed both
    # TensorCores on v7x (costs only one extra ~0.35us step on 1-TC chips).
    if N >= 2:
        Nb = min(Nb, -(-N // 2))
    return int(Nb)


# ----------------------------------------------------------------------------
# Gather-free 4x bilinear upsample (align_corners=False), 4-phase fixed blend.
# Exactly matches PyTorch semantics incl. the negative-src clamp (edge pad).
# ----------------------------------------------------------------------------
def _up4_axis(a, axis):
    L = a.shape[axis]
    first = lax.slice_in_dim(a, 0, 1, axis=axis)
    last = lax.slice_in_dim(a, L - 1, L, axis=axis)
    ap = jnp.concatenate([first, a, last], axis=axis)      # edge pad by 1
    prev = lax.slice_in_dim(ap, 0, L, axis=axis)            # x[i-1] (clamped)
    cur = lax.slice_in_dim(ap, 1, L + 1, axis=axis)         # x[i]
    nxt = lax.slice_in_dim(ap, 2, L + 2, axis=axis)         # x[i+1] (clamped)
    phases = [0.375 * prev + 0.625 * cur,
              0.125 * prev + 0.875 * cur,
              0.875 * cur + 0.125 * nxt,
              0.625 * cur + 0.375 * nxt]
    out = jnp.stack(phases, axis=axis + 1)
    new_shape = list(a.shape)
    new_shape[axis] = 4 * L
    return out.reshape(new_shape)


def upsample_bilinear_4x_nchw(x):
    return _up4_axis(_up4_axis(x, 2), 3)


# Gather-based implementation (kept ONLY for the reference path, so the two
# independent upsample implementations cross-validate).
def _upsample_bilinear_4x_gather(x):
    N, C, Hin, Win = x.shape
    Hout, Wout = 4 * Hin, 4 * Win

    def coords(out_size, in_size):
        o = jnp.arange(out_size, dtype=jnp.float32)
        src = (o + 0.5) / 4.0 - 0.5
        src = jnp.maximum(src, 0.0)          # PyTorch clamps negative src to 0
        i0 = jnp.floor(src).astype(jnp.int32)
        i1 = jnp.minimum(i0 + 1, in_size - 1)
        w = src - i0.astype(jnp.float32)
        return i0, i1, w

    y0, y1, wy = coords(Hout, Hin)
    x0, x1, wx = coords(Wout, Win)
    top = x[:, :, y0, :]
    bot = x[:, :, y1, :]
    wy_ = wy[None, None, :, None]
    rows = top * (1.0 - wy_) + bot * wy_
    left = rows[:, :, :, x0]
    right = rows[:, :, :, x1]
    wx_ = wx[None, None, None, :]
    return left * (1.0 - wx_) + right * wx_


# ----------------------------------------------------------------------------
# Parameter preparation (fold BN scale into weights in f32, then cast)
# ----------------------------------------------------------------------------
def _fold_bn(gamma, beta, mean, var, eps=1e-5):
    scale = gamma / jnp.sqrt(var + eps)
    shift = beta - mean * scale
    return scale, shift


def _prepare_conv_params(params, c1p, c2p, compute_dtype):
    w1_oihw = params["w1_oihw"].astype(jnp.float32)
    w2_oihw = params["w2_oihw"].astype(jnp.float32)
    c2, c1 = w1_oihw.shape[:2]
    sc1, sh1 = _fold_bn(*params["bn1"])
    sc2, sh2 = _fold_bn(*params["bn2"])
    # Fold BN scale into the weights in f32 BEFORE the compute-dtype cast.
    w1_oihw = w1_oihw * sc1[:, None, None, None]
    w2_oihw = w2_oihw * sc2[:, None, None, None]
    # OIHW -> (O, ky, kx, I), pad O and I, reshape to (C2p, 9*Cinp) matching
    # the kernel's (dy, dx, channel) im2col row ordering.
    w1 = jnp.transpose(w1_oihw, (0, 2, 3, 1))
    w1 = jnp.pad(w1, ((0, c2p - c2), (0, 0), (0, 0), (0, c1p - c1)))
    w1 = w1.reshape(c2p, 9 * c1p).astype(compute_dtype)
    w2 = jnp.transpose(w2_oihw, (0, 2, 3, 1))
    w2 = jnp.pad(w2, ((0, c2p - c2), (0, 0), (0, 0), (0, c2p - c2)))
    w2 = w2.reshape(c2p, 9 * c2p).astype(compute_dtype)
    sh1p = jnp.pad(sh1, (0, c2p - c2))[:, None].astype(jnp.float32)
    sh2p = jnp.pad(sh2, (0, c2p - c2))[:, None].astype(jnp.float32)
    return w1, sh1p, w2, sh2p


# ----------------------------------------------------------------------------
# OutputBlock forward
# ----------------------------------------------------------------------------
def _forward_single_frame(params, x, s, compute_dtype):
    N, Cs, H, W = s.shape
    Cin = x.shape[1]
    C1 = Cin + Cs
    C2 = params["w1_oihw"].shape[0]
    C1p = _round_up(C1, 8)                 # sublane-aligned input channels
    C2p = _round_up(C2, 8)                 # sublane-aligned output channels
    Hp, Wp = H + 2, W + 2
    Lp = Hp * Wp
    Lseg = _round_up(Lp, 128)              # lane-aligned per-image segment

    # Gather-free upsample + crop, then ship the whole slab in compute_dtype.
    xu = upsample_bilinear_4x_nchw(x)[:, :, :H, :W]
    xc = jnp.concatenate([xu, s], axis=1).astype(compute_dtype)  # (N,C1,H,W)
    # Zero-pad: extra channels (to sublane multiple) + 1-px spatial halo.
    xpad = jnp.pad(xc, ((0, 0), (0, C1p - C1), (1, 1), (1, 1)))  # (N,C1p,Hp,Wp)
    x_flat = xpad.reshape(N, C1p, Lp)
    x_flat = jnp.pad(x_flat, ((0, 0), (0, 0), (0, Lseg - Lp)))   # lane tail pad

    vmem_limit, budget = _vmem_limits()
    in_itemsize = jnp.dtype(compute_dtype).itemsize
    Nb = _pick_batch_tile(N, Lseg, C1p, C2p, in_itemsize, budget)
    Ng = -(-N // Nb)
    Npad = Ng * Nb
    if Npad != N:
        x_flat = jnp.pad(x_flat, ((0, Npad - N), (0, 0), (0, 0)))

    # Interior mask (1, Lseg): shipped as a tiny input rather than generated
    # from in-kernel iota to avoid relying on vector integer div/mod lowering.
    idx = jnp.arange(Lseg)
    row, col = idx // Wp, idx % Wp
    interior = ((row >= 1) & (row <= H) & (col >= 1) & (col <= W)
                & (idx < Lp)).astype(jnp.float32)
    mask = interior[None, :]

    w1, sh1, w2, sh2 = _prepare_conv_params(params, C1p, C2p, compute_dtype)
    out_flat = conv_block_pallas(x_flat, mask, w1, sh1, w2, sh2,
                                 Nb=Nb, Wp=Wp, vmem_limit_bytes=vmem_limit)
    # Already N-major / channels-first: slice + reshape only.
    out = out_flat[:N, :C2, :Lp].reshape(N, C2, Hp, Wp)[:, :, 1:H + 1, 1:W + 1]
    return out


@functools.partial(jax.jit, static_argnames=("compute_dtype",))
def output_block_forward(params, x, s, compute_dtype=jnp.bfloat16):
    if x.ndim == 5:
        B, T = s.shape[:2]
        xf = x.reshape((B * T,) + x.shape[2:])
        sf = s.reshape((B * T,) + s.shape[2:])
        out = _forward_single_frame(params, xf, sf, compute_dtype)
        return out.reshape((B, T) + out.shape[1:])
    return _forward_single_frame(params, x, s, compute_dtype)


# ----------------------------------------------------------------------------
# Deterministic parameter init (synthetic weights; BN eval-mode stats)
# ----------------------------------------------------------------------------
def init_params(key, in_channels, src_channels, out_channels):
    c1 = in_channels + src_channels
    c2 = out_channels
    k1, k2, k3, k4 = jax.random.split(key, 4)
    w1 = jax.random.normal(k1, (c2, c1, 3, 3), jnp.float32) / jnp.sqrt(c1 * 9.0)
    w2 = jax.random.normal(k2, (c2, c2, 3, 3), jnp.float32) / jnp.sqrt(c2 * 9.0)

    def bn(k, c):
        ka, kb, kc, kd = jax.random.split(k, 4)
        gamma = 1.0 + 0.1 * jax.random.normal(ka, (c,), jnp.float32)
        beta = 0.1 * jax.random.normal(kb, (c,), jnp.float32)
        mean = 0.1 * jax.random.normal(kc, (c,), jnp.float32)
        var = 1.0 + 0.1 * jax.random.uniform(kd, (c,), jnp.float32)
        return (gamma, beta, mean, var)

    return {"w1_oihw": w1, "w2_oihw": w2, "bn1": bn(k3, c2), "bn2": bn(k4, c2)}


# ----------------------------------------------------------------------------
# Pure-JAX reference (independent gather-based upsample, convs via lax.conv)
# ----------------------------------------------------------------------------
def _reference_forward(params, x, s):
    if x.ndim == 5:
        B, T = s.shape[:2]
        out = _reference_forward(params, x.reshape((B * T,) + x.shape[2:]),
                                 s.reshape((B * T,) + s.shape[2:]))
        return out.reshape((B, T) + out.shape[1:])
    H, W = s.shape[2:]
    xu = _upsample_bilinear_4x_gather(x)[:, :, :H, :W]
    xc = jnp.concatenate([xu, s], axis=1)
    dn = ("NCHW", "OIHW", "NCHW")
    sc1, sh1 = _fold_bn(*params["bn1"])
    sc2, sh2 = _fold_bn(*params["bn2"])
    y = jax.lax.conv_general_dilated(xc, params["w1_oihw"], (1, 1), "SAME",
                                     dimension_numbers=dn)
    y = jnp.maximum(y * sc1[None, :, None, None] + sh1[None, :, None, None], 0.0)
    y = jax.lax.conv_general_dilated(y, params["w2_oihw"], (1, 1), "SAME",
                                     dimension_numbers=dn)
    y = jnp.maximum(y * sc2[None, :, None, None] + sh2[None, :, None, None], 0.0)
    return y


# ----------------------------------------------------------------------------
if __name__ == "__main__":
    in_channels, src_channels, out_channels = 4, 3, 8
    B, T = 2, 3
    h, w = 4, 4          # low-res input spatial
    H, W = 14, 13        # src spatial: crops the 16x16 upsample, exercises
                         # the lane tail-padding path (Lp=240 -> Lseg=256)

    key = jax.random.PRNGKey(0)
    kp, kx, ks = jax.random.split(key, 3)
    params = init_params(kp, in_channels, src_channels, out_channels)

    x = jax.random.normal(kx, (B, T, in_channels, h, w), jnp.float32)
    s = jax.random.normal(ks, (B, T, src_channels, H, W), jnp.float32)

    ref = jax.block_until_ready(_reference_forward(params, x, s))

    # f32 MXU path: tight check of the layout / im2col / masking structure
    # (also cross-validates the 4-phase upsample against the gather version).
    out_f32 = jax.block_until_ready(
        output_block_forward(params, x, s, compute_dtype=jnp.float32))
    assert out_f32.shape == (B, T, out_channels, H, W), out_f32.shape
    err32 = float(jnp.max(jnp.abs(out_f32 - ref)))
    assert jnp.allclose(out_f32, ref, rtol=2e-3, atol=2e-3), err32

    # bf16 MXU path (default; recommended on v6e/v7x): bf16-appropriate tol.
    out_bf16 = jax.block_until_ready(
        output_block_forward(params, x, s, compute_dtype=jnp.bfloat16))
    assert out_bf16.shape == (B, T, out_channels, H, W), out_bf16.shape
    err16 = float(jnp.max(jnp.abs(out_bf16 - ref)))
    assert jnp.allclose(out_bf16, ref, rtol=2e-2, atol=2e-2), err16

    print("KERNEL_OK")
</pallas_src>

<mosaic_0001>
module attributes {stable_mosaic.version = 11 : i64} {
  func.func @_conv_block_kernel(%arg0: i32, %arg1: memref<3x8x256xf32, #tpu.memory_space<vmem>>, %arg2: memref<1x256xf32, #tpu.memory_space<vmem>>, %arg3: memref<8x72xf32, #tpu.memory_space<vmem>>, %arg4: memref<8x1xf32, #tpu.memory_space<vmem>>, %arg5: memref<8x72xf32, #tpu.memory_space<vmem>>, %arg6: memref<8x1xf32, #tpu.memory_space<vmem>>, %arg7: memref<3x8x256xf32, #tpu.memory_space<vmem>>) attributes {dimension_semantics = [#tpu.dimension_semantics<parallel>], iteration_bounds = array<i64: 2>, scalar_prefetch = 0 : i64, scratch_operands = 0 : i64, tpu.core_type = #tpu.core_type<tc>, window_params = [{transform_indices = @transform_0, window_bounds = array<i64: 3, 8, 256>}, {pipeline_mode = #tpu.pipeline_mode<synchronous>, transform_indices = @transform_1, window_bounds = array<i64: 1, 256>}, {pipeline_mode = #tpu.pipeline_mode<synchronous>, transform_indices = @transform_2, window_bounds = array<i64: 8, 72>}, {pipeline_mode = #tpu.pipeline_mode<synchronous>, transform_indices = @transform_3, window_bounds = array<i64: 8, 1>}, {pipeline_mode = #tpu.pipeline_mode<synchronous>, transform_indices = @transform_4, window_bounds = array<i64: 8, 72>}, {pipeline_mode = #tpu.pipeline_mode<synchronous>, transform_indices = @transform_5, window_bounds = array<i64: 8, 1>}, {transform_indices = @transform_6, window_bounds = array<i64: 3, 8, 256>}]} {
    %c0_i32 = arith.constant 0 : i32
    %c3_i32 = arith.constant 3 : i32
    %0 = arith.addi %c0_i32, %c3_i32 : i32
    %c1_i32 = arith.constant 1 : i32
    scf.for %arg8 = %c0_i32 to %0 step %c1_i32  : i32 {
      %c1_i32_1 = arith.constant 1 : i32
      %1 = arith.muli %arg8, %c1_i32_1 : i32
      %c0_i32_2 = arith.constant 0 : i32
      %2 = arith.addi %c0_i32_2, %1 : i32
      %c0 = arith.constant 0 : index
      %c0_3 = arith.constant 0 : index
      %3 = vector.load %arg2[%c0, %c0_3] : memref<1x256xf32, #tpu.memory_space<vmem>>, vector<1x256xf32>
      %c0_4 = arith.constant 0 : index
      %c0_5 = arith.constant 0 : index
      %4 = vector.load %arg3[%c0_4, %c0_5] : memref<8x72xf32, #tpu.memory_space<vmem>>, vector<8x72xf32>
      %c0_6 = arith.constant 0 : index
      %c0_7 = arith.constant 0 : index
      %5 = vector.load %arg5[%c0_6, %c0_7] : memref<8x72xf32, #tpu.memory_space<vmem>>, vector<8x72xf32>
      %c0_8 = arith.constant 0 : index
      %c0_9 = arith.constant 0 : index
      %6 = vector.load %arg4[%c0_8, %c0_9] : memref<8x1xf32, #tpu.memory_space<vmem>>, vector<8x1xf32>
      %c0_10 = arith.constant 0 : index
      %c0_11 = arith.constant 0 : index
      %7 = vector.load %arg6[%c0_10, %c0_11] : memref<8x1xf32, #tpu.memory_space<vmem>>, vector<8x1xf32>
      %8 = arith.index_cast %2 : i32 to index
      %c0_12 = arith.constant 0 : index
      %c0_13 = arith.constant 0 : index
      %9 = vector.load %arg1[%8, %c0_12, %c0_13] : memref<3x8x256xf32, #tpu.memory_space<vmem>>, vector<1x8x256xf32>
      %10 = vector.shape_cast %9 : vector<1x8x256xf32> to vector<8x256xf32>
      %c16_i32 = arith.constant 16 : i32
      %11 = tpu.dynamic_rotate %10 by %c16_i32 dim 1 : vector<8x256xf32>, i32 -> vector<8x256xf32>
      %c15_i32 = arith.constant 15 : i32
      %12 = tpu.dynamic_rotate %10 by %c15_i32 dim 1 : vector<8x256xf32>, i32 -> vector<8x256xf32>
      %c14_i32 = arith.constant 14 : i32
      %13 = tpu.dynamic_rotate %10 by %c14_i32 dim 1 : vector<8x256xf32>, i32 -> vector<8x256xf32>
      %c1_i32_14 = arith.constant 1 : i32
      %14 = tpu.dynamic_rotate %10 by %c1_i32_14 dim 1 : vector<8x256xf32>, i32 -> vector<8x256xf32>
      %c255_i32 = arith.constant 255 : i32
      %15 = tpu.dynamic_rotate %10 by %c255_i32 dim 1 : vector<8x256xf32>, i32 -> vector<8x256xf32>
      %c242_i32 = arith.constant 242 : i32
      %16 = tpu.dynamic_rotate %10 by %c242_i32 dim 1 : vector<8x256xf32>, i32 -> vector<8x256xf32>
      %c241_i32 = arith.constant 241 : i32
      %17 = tpu.dynamic_rotate %10 by %c241_i32 dim 1 : vector<8x256xf32>, i32 -> vector<8x256xf32>
      %c240_i32 = arith.constant 240 : i32
      %18 = tpu.dynamic_rotate %10 by %c240_i32 dim 1 : vector<8x256xf32>, i32 -> vector<8x256xf32>
      %19 = tpu.concatenate %11, %12, %13, %14, %10, %15, %16, %17, %18 in 0 : vector<8x256xf32>, vector<8x256xf32>, vector<8x256xf32>, vector<8x256xf32>, vector<8x256xf32>, vector<8x256xf32>, vector<8x256xf32>, vector<8x256xf32>, vector<8x256xf32> -> vector<72x256xf32>
      %cst = arith.constant dense<0.000000e+00> : vector<8x256xf32>
      %20 = tpu.matmul %4, %19, %cst {dimension_numbers = #tpu.dot_dimension_numbers<[1], [0], [0], [1], [0, 0, 1, 1], [], []>} : vector<8x72xf32>, vector<72x256xf32>, vector<8x256xf32> -> vector<8x256xf32>
      %21 = vector.broadcast %6 : vector<8x1xf32> to vector<8x256xf32>
      %22 = arith.addf %20, %21 : vector<8x256xf32>
      %cst_15 = arith.constant 0.000000e+00 : f32
      %23 = vector.broadcast %cst_15 : f32 to vector<8x256xf32>
      %24 = arith.maximumf %22, %23 : vector<8x256xf32>
      %25 = vector.broadcast %3 : vector<1x256xf32> to vector<8x256xf32>
      %26 = arith.mulf %24, %25 : vector<8x256xf32>
      %c16_i32_16 = arith.constant 16 : i32
      %27 = tpu.dynamic_rotate %26 by %c16_i32_16 dim 1 : vector<8x256xf32>, i32 -> vector<8x256xf32>
      %c15_i32_17 = arith.constant 15 : i32
      %28 = tpu.dynamic_rotate %26 by %c15_i32_17 dim 1 : vector<8x256xf32>, i32 -> vector<8x256xf32>
      %c14_i32_18 = arith.constant 14 : i32
      %29 = tpu.dynamic_rotate %26 by %c14_i32_18 dim 1 : vector<8x256xf32>, i32 -> vector<8x256xf32>
      %c1_i32_19 = arith.constant 1 : i32
      %30 = tpu.dynamic_rotate %26 by %c1_i32_19 dim 1 : vector<8x256xf32>, i32 -> vector<8x256xf32>
      %c255_i32_20 = arith.constant 255 : i32
      %31 = tpu.dynamic_rotate %26 by %c255_i32_20 dim 1 : vector<8x256xf32>, i32 -> vector<8x256xf32>
      %c242_i32_21 = arith.constant 242 : i32
      %32 = tpu.dynamic_rotate %26 by %c242_i32_21 dim 1 : vector<8x256xf32>, i32 -> vector<8x256xf32>
      %c241_i32_22 = arith.constant 241 : i32
      %33 = tpu.dynamic_rotate %26 by %c241_i32_22 dim 1 : vector<8x256xf32>, i32 -> vector<8x256xf32>
      %c240_i32_23 = arith.constant 240 : i32
      %34 = tpu.dynamic_rotate %26 by %c240_i32_23 dim 1 : vector<8x256xf32>, i32 -> vector<8x256xf32>
      %35 = tpu.concatenate %27, %28, %29, %30, %26, %31, %32, %33, %34 in 0 : vector<8x256xf32>, vector<8x256xf32>, vector<8x256xf32>, vector<8x256xf32>, vector<8x256xf32>, vector<8x256xf32>, vector<8x256xf32>, vector<8x256xf32>, vector<8x256xf32> -> vector<72x256xf32>
      %cst_24 = arith.constant dense<0.000000e+00> : vector<8x256xf32>
      %36 = tpu.matmul %5, %35, %cst_24 {dimension_numbers = #tpu.dot_dimension_numbers<[1], [0], [0], [1], [0, 0, 1, 1], [], []>} : vector<8x72xf32>, vector<72x256xf32>, vector<8x256xf32> -> vector<8x256xf32>
      %37 = vector.broadcast %7 : vector<8x1xf32> to vector<8x256xf32>
      %38 = arith.addf %36, %37 : vector<8x256xf32>
      %cst_25 = arith.constant 0.000000e+00 : f32
      %39 = vector.broadcast %cst_25 : f32 to vector<8x256xf32>
      %40 = arith.maximumf %38, %39 : vector<8x256xf32>
      %41 = arith.index_cast %2 : i32 to index
      %c0_26 = arith.constant 0 : index
      %c0_27 = arith.constant 0 : index
      %42 = vector.load %arg7[%41, %c0_26, %c0_27] : memref<3x8x256xf32, #tpu.memory_space<vmem>>, vector<1x8x256xf32>
      %43 = vector.shape_cast %42 : vector<1x8x256xf32> to vector<8x256xf32>
      %44 = vector.shape_cast %40 : vector<8x256xf32> to vector<1x8x256xf32>
      tpu.vector_store %arg7[%41, %c0_26, %c0_27], %44 {strides = array<i32>} : memref<3x8x256xf32, #tpu.memory_space<vmem>>, vector<1x8x256xf32>,
    }
    %c3_i32_0 = arith.constant 3 : i32
    return
  }
  func.func @transform_0(%arg0: i32) -> (i32, i32, i32) {
    %c0_i32 = arith.constant 0 : i32
    %c0_i32_0 = arith.constant 0 : i32
    %c0_i32_1 = arith.constant 0 : i32
    return %arg0, %c0_i32, %c0_i32_0 : i32, i32, i32
  }
  func.func @transform_1(%arg0: i32) -> (i32, i32) {
    %c0_i32 = arith.constant 0 : i32
    %c0_i32_0 = arith.constant 0 : i32
    %c0_i32_1 = arith.constant 0 : i32
    return %c0_i32, %c0_i32_0 : i32, i32
  }
  func.func @transform_2(%arg0: i32) -> (i32, i32) {
    %c0_i32 = arith.constant 0 : i32
    %c0_i32_0 = arith.constant 0 : i32
    %c0_i32_1 = arith.constant 0 : i32
    return %c0_i32, %c0_i32_0 : i32, i32
  }
  func.func @transform_3(%arg0: i32) -> (i32, i32) {
    %c0_i32 = arith.constant 0 : i32
    %c0_i32_0 = arith.constant 0 : i32
    %c0_i32_1 = arith.constant 0 : i32
    return %c0_i32, %c0_i32_0 : i32, i32
  }
  func.func @transform_4(%arg0: i32) -> (i32, i32) {
    %c0_i32 = arith.constant 0 : i32
    %c0_i32_0 = arith.constant 0 : i32
    %c0_i32_1 = arith.constant 0 : i32
    return %c0_i32, %c0_i32_0 : i32, i32
  }
  func.func @transform_5(%arg0: i32) -> (i32, i32) {
    %c0_i32 = arith.constant 0 : i32
    %c0_i32_0 = arith.constant 0 : i32
    %c0_i32_1 = arith.constant 0 : i32
    return %c0_i32, %c0_i32_0 : i32, i32
  }
  func.func @transform_6(%arg0: i32) -> (i32, i32, i32) {
    %c0_i32 = arith.constant 0 : i32
    %c0_i32_0 = arith.constant 0 : i32
    %c0_i32_1 = arith.constant 0 : i32
    return %arg0, %c0_i32, %c0_i32_0 : i32, i32, i32
  }
}

</mosaic_0001>

<bundles_post_ra>
// kernel: output_block_forward.1
= control target key start
LH: loop header
LB: loop body
LE: loop exit
PB: predicated region body
PF: predicated region fallthrough
CT: control target
= control target key end

     0   :  { %11 = vsyncpa [#allocation3], 0  ;;  %s1785_s0 = inlined_call_operand.hbm [shape: f32[6,8,256], index: 0, kind: input, shape index: {}]   ;;  %s1786_s1 = inlined_call_operand.hbm [shape: f32[1,256], index: 1, kind: input, shape index: {}]   ;;  %s1787_s2 = inlined_call_operand.hbm [shape: f32[8,72], index: 2, kind: input, shape index: {}]   ;;  %s1788_s3 = inlined_call_operand.hbm [shape: f32[8,1], index: 3, kind: input, shape index: {}]   ;;  %s1789_s4 = inlined_call_operand.hbm [shape: f32[8,72], index: 4, kind: input, shape index: {}]   ;;  %s1790_s5 = inlined_call_operand.hbm [shape: f32[8,1], index: 5, kind: input, shape index: {}]   ;;  %s1791_s6 = inlined_call_operand.hbm [shape: f32[6,8,256], index: 6, kind: output, shape index: {}]  }
   0x1   :  { %13 = vsyncpa [#allocation3 + $0x1], 0 }
   0x2   :  { %14 = vsyncpa [#allocation6], 0 }
   0x3   :  { %15 = vsyncpa [#allocation9], 0 }
   0x4   :  { %16 = vsyncpa [#allocation12], 0 }
   0x5   :  { %17 = vsyncpa [#allocation4], 0 }
   0x6   :  { %19 = vsyncpa [#allocation4 + $0x1], 0  ;;  %s1355_s21 = smov 0   ;;  %s1357_s22 = smov 0  }
   0x7   :  { %s1359_s23 = smov 0   ;;  %s1361_s24 = smov 0  }
   0x8 LB: > { %s1299_s25 = smov [#allocation5]   ;;  %s1376_s27 = sadd.s32 4294967295, %s1293_s24   ;;  %s1293_s24 = sphi %s1361_s24, %s1816_s24   ;;  %s1289_s23 = sphi %s1359_s23, %s1815_s23   ;;  %s1285_s22 = sphi %s1357_s22, %s1814_s22   ;;  %s1281_s21 = sphi %s1355_s21, %s1813_s21  }
   0x9   : > { %s200_s26 = sshll.u32 %s1299_s25, 4  ;;  %p784_p0 = scmp.ge.s32.totalorder %s1293_s24, 1  ;;  %s1381_s26 = int_to_ptr.vmem [resolvable:$true] %s200_s26 }
   0xa   : > { %p1792_p1 = scmp.eq.s32.totalorder %s1376_s27, 0  ;;  %p187_p2 = scmp.lt.s32.totalorder %s1293_s24, 3 }
   0xb   : > { %s1300_s29 = smov [#allocation8]   ;;  %s1301_s7 = smov [#allocation7]  }
   0xc   : > { %p1383_p3 = pnand %p784_p0, %p187_p2  ;;  %s222_s30 = sshll.u32 %s1300_s29, 4  ;;  %s1390_s30 = int_to_ptr.vmem [resolvable:$true] %s222_s30 }
   0xd   : > { %s211_s8 = sshll.u32 %s1301_s7, 4  ;;  %s1302_s10 = smov [#allocation10]   ;;  %s1398_s8 = int_to_ptr.vmem [resolvable:$true] %s211_s8 }
   0xe   : > { %s1795_s28 = scalar_select %p1383_p3, 1, 0 }
   0xf   : > { %p874_p5 = pneg %p1383_p3  ;;  %s1400_s11 = sshll.u32 %s1302_s10, 4  ;;  %s234_s11 = int_to_ptr.vmem [resolvable:$true] %s1400_s11 }
  0x10   : > { %s1041_s14 = scalar_lea.hbm %s1786_s1, 32 }
  0x11   : > { %p1394_p6 = pnand %p874_p5, %p1792_p1  ;;  %p1042_p7 = scmp.ne.s32.totalorder %s1786_s1, %s1041_s14 }
  0x12   : > { %p1048_p11 = scmp.lt.u32.totalorder %s1041_s14, %s1786_s1 }
  0x13   : > { %p1410_p8 = pneg %p1394_p6 }
  0x15   : > { %p1044_p9 = pnand %p1410_p8, %p1042_p7 }
  0x17   : > { %p1045_p10 = pneg %p1044_p9 }
  0x19   : > { %p1050_p12 = pnand %p1048_p11, %p1045_p10 }
  0x1b   : > { %1053 = shalt.err (!%p1050_p12)
}
  0x1c   : > { %s1054_s20 = scalar_lea.vmem %s1381_s26, 32  ;;  %p1062_p5 = scmp.lt.s32.totalorder %s1381_s26, %s1381_s26 }
  0x1d   : > { %p1055_p13 = scmp.ne.s32.totalorder %s1381_s26, %s1054_s20  ;;  %p1063_p4 = scmp.lt.s32.totalorder %s1054_s20, %s1054_s20 }
  0x1f   : > { %p1057_p0 = pnand %p1055_p13, %p1410_p8  ;;  %p1064_p7 = por %p1063_p4, %p1062_p5 }
  0x21   : > { %p1058_p2 = pneg %p1057_p0 }
  0x23   : > { %p1065_p9 = pnand %p1064_p7, %p1058_p2 }
  0x25   : > { %1068 = shalt.err (!%p1065_p9)
}
  0x26   : > { %877 = dma.hbm_to_vmem [thread:$0]  (!%p1394_p6), %s1786_s1, 32, %s1381_s26, [#allocation6]  }
  0x27   : > { %s1069_s12 = scalar_lea.hbm %s1788_s3, 128 }
  0x28   : > { %p1070_p10 = scmp.ne.s32.totalorder %s1788_s3, %s1069_s12  ;;  %p1076_p12 = scmp.lt.u32.totalorder %s1069_s12, %s1788_s3 }
  0x2a   : > { %p1072_p4 = pnand %p1070_p10, %p1410_p8 }
  0x2c   : > { %p1073_p11 = pneg %p1072_p4 }
  0x2e   : > { %p1078_p13 = pnand %p1076_p12, %p1073_p11 }
  0x30   : > { %1081 = shalt.err (!%p1078_p13)
}
  0x31   : > { %s1082_s26 = scalar_lea.vmem %s1390_s30, 128  ;;  %p1090_p7 = scmp.lt.s32.totalorder %s1390_s30, %s1390_s30 }
  0x32   : > { %p1083_p0 = scmp.ne.s32.totalorder %s1390_s30, %s1082_s26  ;;  %p1091_p9 = scmp.lt.s32.totalorder %s1082_s26, %s1082_s26 }
  0x34   : > { %p1085_p2 = pnand %p1083_p0, %p1410_p8  ;;  %p1092_p10 = por %p1091_p9, %p1090_p7 }
  0x36   : > { %p1086_p5 = pneg %p1085_p2 }
  0x38   : > { %p1093_p4 = pnand %p1092_p10, %p1086_p5 }
  0x3a   : > { %1096 = shalt.err (!%p1093_p4)
}
  0x3b   : > { %883 = dma.hbm_to_vmem [thread:$0]  (!%p1394_p6), %s1788_s3, 128, %s1390_s30, [#allocation9]  }
  0x3c   : > { %s1097_s29 = scalar_lea.hbm %s1787_s2, 128 }
  0x3d   : > { %p1098_p11 = scmp.ne.s32.totalorder %s1787_s2, %s1097_s29  ;;  %p1104_p0 = scmp.lt.u32.totalorder %s1097_s29, %s1787_s2 }
  0x3f   : > { %p1100_p12 = pnand %p1098_p11, %p1410_p8 }
  0x41   : > { %p1101_p13 = pneg %p1100_p12 }
  0x43   : > { %p1106_p2 = pnand %p1104_p0, %p1101_p13 }
  0x45   : > { %1109 = shalt.err (!%p1106_p2)
}
  0x46   : > { %s1110_s30 = scalar_lea.vmem %s1398_s8, 128  ;;  %p1118_p10 = scmp.lt.s32.totalorder %s1398_s8, %s1398_s8 }
  0x47   : > { %p1111_p5 = scmp.ne.s32.totalorder %s1398_s8, %s1110_s30  ;;  %p1119_p4 = scmp.lt.s32.totalorder %s1110_s30, %s1110_s30 }
  0x49   : > { %p1113_p7 = pnand %p1111_p5, %p1410_p8  ;;  %p1120_p11 = por %p1119_p4, %p1118_p10 }
  0x4b   : > { %p1114_p9 = pneg %p1113_p7 }
  0x4d   : > { %p1121_p12 = pnand %p1120_p11, %p1114_p9 }
  0x4f   : > { %1124 = shalt.err (!%p1121_p12)
}
  0x50   : > { %880 = dma.hbm_to_vmem [thread:$0]  (!%p1394_p6), %s1787_s2, 128, %s1398_s8, [#allocation6]  }
  0x51   : > { %s1303_s16 = smov [#allocation11]   ;;  %s1125_s20 = scalar_lea.hbm %s1789_s4, 128 }
  0x52   : > { %s244_s26 = sshll.u32 %s1303_s16, 4  ;;  %p1126_p13 = scmp.ne.s32.totalorder %s1789_s4, %s1125_s20  ;;  %s245_s26 = int_to_ptr.vmem [resolvable:$true] %s244_s26 }
  0x53   : > { %p1132_p5 = scmp.lt.u32.totalorder %s1125_s20, %s1789_s4 }
  0x54   : > { %p1128_p0 = pnand %p1126_p13, %p1410_p8 }
  0x56   : > { %p1129_p2 = pneg %p1128_p0 }
  0x58   : > { %p1134_p7 = pnand %p1132_p5, %p1129_p2 }
  0x5a   : > { %1137 = shalt.err (!%p1134_p7)
}
  0x5b   : > { %s1138_s8 = scalar_lea.vmem %s234_s11, 128  ;;  %p1146_p11 = scmp.lt.s32.totalorder %s234_s11, %s234_s11 }
  0x5c   : > { %p1139_p9 = scmp.ne.s32.totalorder %s234_s11, %s1138_s8  ;;  %p1147_p12 = scmp.lt.s32.totalorder %s1138_s8, %s1138_s8 }
  0x5e   : > { %p1141_p10 = pnand %p1139_p9, %p1410_p8  ;;  %p1148_p1 = por %p1147_p12, %p1146_p11 }
  0x60   : > { %p1142_p4 = pneg %p1141_p10 }
  0x62   : > { %p1149_p3 = pnand %p1148_p1, %p1142_p4 }
  0x64   : > { %1152 = shalt.err (!%p1149_p3)
}
  0x65   : > { %886 = dma.hbm_to_vmem [thread:$0]  (!%p1394_p6), %s1789_s4, 128, %s234_s11, [#allocation9]  }
  0x66   : > { %s1153_s15 = scalar_lea.hbm %s1790_s5, 128 }
  0x67   : > { %p1154_p13 = scmp.ne.s32.totalorder %s1790_s5, %s1153_s15  ;;  %p1160_p3 = scmp.lt.u32.totalorder %s1153_s15, %s1790_s5 }
  0x69   : > { %p1156_p0 = pnand %p1154_p13, %p1410_p8 }
  0x6b   : > { %p1157_p1 = pneg %p1156_p0 }
  0x6d   : > { %p1162_p2 = pnand %p1160_p3, %p1157_p1 }
  0x6f   : > { %1165 = shalt.err (!%p1162_p2)
}
  0x70   : > { %s1166_s25 = scalar_lea.vmem %s245_s26, 128  ;;  %p1174_p10 = scmp.lt.s32.totalorder %s245_s26, %s245_s26 }
  0x71   : > { %p1167_p5 = scmp.ne.s32.totalorder %s245_s26, %s1166_s25  ;;  %p1175_p4 = scmp.lt.s32.totalorder %s1166_s25, %s1166_s25 }
  0x73   : > { %p1169_p7 = pnand %p1167_p5, %p1410_p8  ;;  %p1176_p11 = por %p1175_p4, %p1174_p10 }
  0x75   : > { %p1170_p9 = pneg %p1169_p7 }
  0x77   : > { %p1177_p12 = pnand %p1176_p11, %p1170_p9 }
  0x79   : > { %1180 = shalt.err (!%p1177_p12)
}
  0x7a   : > { %889 = dma.hbm_to_vmem [thread:$0]  (!%p1394_p6), %s1790_s5, 128, %s245_s26, [#allocation12]  }
  0x7b   : > { %s783_s17 = sadd.s32 4294967294, %s1293_s24   ;;  %s1516_s9 = sadd.s32 1, %s1293_s24  }
  0x7c   : > { %s32_s7 = sadd.s32 1, %s1289_s23  ;;  %s29_s10 = ssub.s32 %s1293_s24, %s1516_s9 }
  0x7d   : > { %p39_p8 = scmp.ne.s32.totalorder %s1289_s23, %s1285_s22  ;;  %p30_p13 = scmp.eq.s32.totalorder %s29_s10, 0 }
  0x7e   : > { %p40_p0 = scmp.eq.s32.totalorder %s1293_s24, 0  ;;  %p45_p1 = scmp.ne.s32.totalorder %s1285_s22, %s1281_s21 }
  0x7f   : > { %p174_p3 = scmp.eq.s32.totalorder %s1376_s27, 1  ;;  %p1798_p5 = scmp.eq.s32.totalorder %s1376_s27, 0 }
  0x80   : > { %s1528_s8 = scalar_select %p30_p13, %s1289_s23, %s32_s7  }
  0x81   : > { %p41_p2 = por %p40_p0, %p39_p8  ;;  %p1532_p7 = por %p1798_p5, %p45_p1 }
  0x82   : > { %p1536_p6 = por %p174_p3, %p39_p8  ;;  %p180_p9 = scmp.eq.s32.totalorder %s783_s17, 1 }
  0x83   : > { %p903_p10 = scmp.lt.s32.totalorder %s1293_s24, 2  ;;  %s255_s13 = sand.u32 1, %s1289_s23  }
  0x84   : > { %s1800_s26 = scalar_select %p1536_p6, 1, 0 }
  0x85   : > { %p1542_p4 = por %p180_p9, %p45_p1  ;;  %s848_s14 = smul.u32 48, %s255_s13 }
  0x86   : > { %p1546_p11 = pnand %p903_p10, %p41_p2  ;;  %s814_s16 = smul.u32 768, %s1293_s24 }
  0x87   : > { %s1801_s30 = scalar_select %p1542_p4, 1, 0 }
  0x88   : > { %s1554_s20 = scalar_lea.hbm %s1785_s0, %s814_s16  ;;  %s259_s25 = scalar_lea.vmem [#allocation2], %s848_s14 }
  0x89   : > { %s267_s11 = sshll.u32 %s259_s25, 4  ;;  %s1558_s29 = scalar_lea.sflag [#allocation3], %s255_s13  ;;  %s1556_s11 = int_to_ptr.vmem [resolvable:$true] %s267_s11 }
  0x8a   : > { %s1181_s17 = scalar_lea.hbm %s1554_s20, 768  ;;  %p1183_p8 = pneg %p1546_p11 }
  0x8b   : > { %p1182_p12 = scmp.ne.s32.totalorder %s1554_s20, %s1181_s17  ;;  %s1186_s16 = scalar_lea.hbm %s1785_s0, 1536 }
  0x8c   : > { %p1187_p1 = scmp.lt.u32.totalorder %s1554_s20, %s1785_s0  ;;  %p1188_p3 = scmp.lt.u32.totalorder %s1186_s16, %s1181_s17 }
  0x8d   : > { %p1184_p13 = pnand %p1183_p8, %p1182_p12  ;;  %p1190_p5 = scmp.lt.u32.totalorder %s1181_s17, %s1554_s20 }
  0x8e   : > { %p1189_p2 = por %p1188_p3, %p1187_p1 }
  0x8f   : > { %p1185_p0 = pneg %p1184_p13 }
  0x90   : > { %p1191_p9 = por %p1190_p5, %p1189_p2 }
  0x92   : > { %p1192_p10 = pnand %p1191_p9, %p1185_p0 }
  0x94   : > { %1195 = shalt.err (!%p1192_p10)
}
  0x95   : > { %s1196_s13 = scalar_lea.vmem %s1556_s11, 768  ;;  %s1304_s14 = smov [#allocation2]  }
  0x96   : > { %p1197_p12 = scmp.ne.s32.totalorder %s1556_s11, %s1196_s13  ;;  %s1201_s25 = sshll.u32 %s1304_s14, 4  ;;  %s1202_s25 = int_to_ptr.vmem [resolvable:$false] %s1201_s25 }
  0x97   : > { %s1203_s7 = scalar_lea.vmem %s1202_s25, 1536  ;;  %p1204_p6 = scmp.lt.s32.totalorder %s1556_s11, %s1202_s25 }
  0x98   : > { %p1199_p13 = pnand %p1197_p12, %p1183_p8  ;;  %p1205_p1 = scmp.lt.s32.totalorder %s1203_s7, %s1196_s13 }
  0x9a   : > { %p1200_p4 = pneg %p1199_p13  ;;  %p1206_p3 = por %p1205_p1, %p1204_p6 }
  0x9c   : > { %p1207_p2 = pnand %p1206_p3, %p1200_p4 }
  0x9e   : > { %1210 = shalt.err (!%p1207_p2)
}
  0x9f   : > { %s1305_s17 = smov 256   ;;  %s1306_s10 = smov 16  }
  0xa0   : > { %893 = dma.hbm_to_vmem [thread:$0]  (!%p1546_p11), %s1554_s20, 768, %s1556_s11, %s1558_s29, %s1305_s17, %s1305_s17, %s1306_s10  }
  0xa1   : > { %p1803_p8 = scmp.ne.s32.totalorder %s1795_s28, 0 }
  0xa2   : > { %s1589_s16 = sand.u32 (!%p1803_p8), 1, %s1285_s22  }
  0xa3   : > { %279 = sbr.rel (%p1803_p8) target bundleno = 920 (0x398), region = 44  ;;  %s282_s19 = scalar_lea.sflag (!%p1803_p8), [#allocation3], %s1589_s16 }
  0xa4   : > { %s849_s18 = smul.u32 (!%p1803_p8), 48, %s1589_s16 }
  0xa6   : > { %s1593_s13 = scalar_lea.vmem (!%p1803_p8), [#allocation2], %s849_s18 }
  0xaa   : > { %1260 = dma.done.wait (%p1532_p7), %s282_s19, 768  }
  0xab   : > { %1262 = vsyncadd (%p1532_p7), %s282_s19, 4294966528  ;;  %p1804_p6 = scmp.eq.s32.totalorder %s1376_s27, 0 }
  0xad   : > { %1264 = dma.done.wait (%p1804_p6), [#allocation6], 160   ;;  %p1805_p4 = pmov %p1804_p6 }
  0xaf   : > { %1266 = vsyncadd (%p1805_p4), [#allocation6], 4294967136  ;;  %p1806_p11 = pmov %p1805_p4 }
  0xb0   : > { %p1807_p0 = pmov %p1805_p4 }
  0xb1   : > { %1268 = dma.done.wait (%p1806_p11), [#allocation9], 256  }
  0xb2   : > { %1270 = vsyncadd (%p1807_p0), [#allocation9], 4294967040  ;;  %p1808_p5 = pmov %p1807_p0 }
  0xb3   : > { %p1809_p9 = pmov %p1807_p0 }
  0xb4   : > { %1272 = dma.done.wait (%p1808_p5), [#allocation12], 128  }
  0xb5   : > { %1274 = vsyncadd (%p1809_p9), [#allocation12], 4294967168  ;;  %s1611_s28 = scalar_lea.vmem [#allocation13], %s849_s18  ;;  %s1613_s12 = smov 0  }
  0xb6 LB: >> { %s810_s15 = sshll.u32 %s1297_s12, 4  ;;  %s1307_s11 = smov 14   ;;  %v1315_v3 = vmov 0.0   ;;  %v345_v4 = vld [vmem:[#allocation8] sm:$0xff]  ;;  %v1316_v5 = vmov 0   ;;  %v356_v6 = vlaneseq  ;;  %v343_v55 = vld [vmem:[#allocation7] sm:$0xff]  ;;  %s1297_s12 = sphi %s1613_s12, %s341_s12  }
  0xb7   : >> { %s349_s20 = scalar_lea.vmem %s1593_s13, %s810_s15 [#allocation2]  ;;  %s1308_s29 = smov 16   ;;  %483 = vmatprep.mubr.f32.mxu0 %v1315_v3  ;;  %625 = vmatprep.mubr.f32.mxu1 %v1315_v3  ;;  %vm415_vm8 = vcmask 588800   ;;  %v342_v59 = vld [vmem:[#allocation5] sm:$0x3] }
  0xb8   : >> { %v1622_v0 = vld [vmem:[%s349_s20] sm:$0xff]  ;;  %v1624_v1 = vld [vmem:[%s349_s20 + $0x8] sm:$0xff]  ;;  %s1309_s14 = smov 1   ;;  %s1310_s25 = smov 15   ;;  %1004 = vset.pattern.permute.xlu1 %v1316_v5  ;;  %1040 = vset.pattern.permute.xlu0 %v1316_v5  ;;  %v1640_v7 = vand.u32 127, %v356_v6  ;;  %v494_v56 = vshrl.u32 %v356_v6, 7 }
  0xb9   : >> { %v979_v2 = vpack.i.bf16 %v1624_v1, %v1622_v0  ;;  %s1311_s7 = smov 127   ;;  %s1312_s17 = smov 114   ;;  %v346_v6 = vld [vmem:[#allocation11] sm:$0xff] }
  0xba   : >> { %s1313_s10 = smov 113   ;;  %s1314_s18 = smov 112   ;;  %vm358_vm0 = vcmp.lt.s32.totalorder %v1640_v7, 16  ;;  %vm365_vm1 = vcmp.lt.s32.totalorder %v1640_v7, 15  ;;  %vm372_vm2 = vcmp.lt.s32.totalorder %v1640_v7, 14  ;;  %vm379_vm3 = vcmp.lt.s32.totalorder %v1640_v7, 1 }
  0xbb   : >> { %980 = vrot.lane.b32.xlu1 %v979_v2, %s1307_s11  ;;  %970 = vrot.lane.b32.xlu0 %v979_v2, %s1308_s29  ;;  %vm386_vm4 = vcmp.lt.s32.totalorder %v1640_v7, 127  ;;  %vm393_vm5 = vcmp.lt.s32.totalorder %v1640_v7, 114  ;;  %vm400_vm6 = vcmp.lt.s32.totalorder %v1640_v7, 113  ;;  %vm407_vm7 = vcmp.lt.s32.totalorder %v1640_v7, 112  ;;  %s635_s19 = scalar_lea.vmem %s1611_s28, %s810_s15 [#allocation13]  ;;  %s341_s12 = sadd.s32 1, %s1297_s12  }
  0xbc   : >> { %v495_v57 = vsub.s32 0, %v494_v56  ;;  %v499_v60 = vsub.s32 1, %v494_v56  ;;  %v344_v56 = vld [vmem:[#allocation10] sm:$0xff]  ;;  %p338_p7 = scmp.ge.s32.totalorder %s341_s12, 3  }
  0xbd   : > { %s815_s20 = smul.u32 (%p338_p7), 768, %s1376_s27  ;;  %p1810_p12 = scmp.ne.s32.totalorder (%p338_p7), %s1800_s26, 0 }
  0xbe   : >> { %v496_v63 = vrot.slane %v342_v59, %v495_v57  ;;  %s1317_s13 = smov (%p338_p7), [#allocation13]  }
  0xbf   : >> { %985 = vrot.lane.b32.xlu1 %v979_v2, %s1309_s14  ;;  %975 = vrot.lane.b32.xlu0 %v979_v2, %s1310_s25  ;;  %s1739_s15 = scalar_lea.hbm (%p338_p7), %s1791_s6, %s815_s20  ;;  %s1215_s12 = sshll.u32 (%p338_p7), %s1317_s13, 4  ;;  %s1216_s12 = int_to_ptr.vmem [resolvable:$false] %s1215_s12 }
  0xc0   : > { %s1217_s27 = scalar_lea.vmem (%p338_p7), %s1216_s12, 1536 }
  0xc3   : >> { %990 = vrot.lane.b32.xlu0 %v979_v2, %s1311_s7  ;;  %995 = vrot.lane.b32.xlu1 %v979_v2, %s1312_s17 }
  0xc7   : >> { %1000 = vrot.lane.b32.xlu0 %v979_v2, %s1313_s10  ;;  %403 = vrot.lane.b32.xlu1 %v1622_v0, %s1314_s18  ;;  %v500_v2 = vrot.slane %v342_v59, %v499_v60 }
  0xcb   : >> { %405 = vrot.lane.b32.xlu0 %v1624_v1, %s1314_s18  ;;  %412 = vperm.xlu1 %1004, %v345_v4  }
 0x12d   : >> { %v981_v8 = vpop.permute.xlu1 %980  ;;  %v971_v9 = vpop.permute.xlu0 %970 }
 0x12e   : >> { %v973_v10 = vunpack.i.h.bf16 %v971_v9  ;;  %v972_v11 = vunpack.i.l.bf16 %v971_v9  ;;  %v983_v12 = vunpack.i.h.bf16 %v981_v8  ;;  %v982_v13 = vunpack.i.l.bf16 %v981_v8 }
 0x130   : >> { %v359_v20 = vsel %vm358_vm0, %v972_v11, %v973_v10  ;;  %v360_v21 = vsel %vm358_vm0, %v973_v10, %v972_v11  ;;  %v373_v24 = vsel %vm372_vm2, %v982_v13, %v983_v12  ;;  %v374_v35 = vsel %vm372_vm2, %v983_v12, %v982_v13 }
 0x131   : >> { %v986_v14 = vpop.permute.xlu1 %985  ;;  %v976_v15 = vpop.permute.xlu0 %975 }
 0x132   : >> { %v988_v16 = vunpack.i.h.bf16 %v986_v14  ;;  %v987_v17 = vunpack.i.l.bf16 %v986_v14  ;;  %v978_v18 = vunpack.i.h.bf16 %v976_v15  ;;  %v977_v19 = vunpack.i.l.bf16 %v976_v15 }
 0x134   : >> { %v366_v22 = vsel %vm365_vm1, %v977_v19, %v978_v18  ;;  %v367_v23 = vsel %vm365_vm1, %v978_v18, %v977_v19  ;;  %v380_v25 = vsel %vm379_vm3, %v987_v17, %v988_v16  ;;  %v381_v36 = vsel %vm379_vm3, %v988_v16, %v987_v17 }
 0x135   : >> { %v816_v26 = vpack.c.bf16 %v366_v22, %v359_v20  ;;  %v818_v27 = vpack.c.bf16 %v367_v23, %v360_v21  ;;  %v991_v28 = vpop.permute.xlu0 %990  ;;  %v996_v29 = vpop.permute.xlu1 %995  ;;  %v820_v34 = vpack.c.bf16 %v380_v25, %v373_v24  ;;  %v822_v41 = vpack.c.bf16 %v381_v36, %v374_v35 }
 0x136   : >> { %v993_v30 = vunpack.i.h.bf16 %v991_v28  ;;  %v992_v31 = vunpack.i.l.bf16 %v991_v28  ;;  %v998_v32 = vunpack.i.h.bf16 %v996_v29  ;;  %v997_v33 = vunpack.i.l.bf16 %v996_v29 }
 0x137   : >> { %817 = vmatprep.subr.bf16.mxu0 %v816_v26 }
 0x138   : >> { %819 = vmatpush1.bf16.msra.mxu0 %v818_v27  ;;  %v388_v37 = vsel %vm386_vm4, %v993_v30, %v992_v31  ;;  %v387_v40 = vsel %vm386_vm4, %v992_v31, %v993_v30  ;;  %v395_v44 = vsel %vm393_vm5, %v998_v32, %v997_v33  ;;  %v394_v48 = vsel %vm393_vm5, %v997_v33, %v998_v32 }
 0x139   : >> { %821 = vmatprep.subr.bf16.mxu0 %v820_v34  ;;  %v1001_v38 = vpop.permute.xlu0 %1000  ;;  %v824_v39 = vpack.c.bf16 %v388_v37, %v1624_v1  ;;  %v826_v45 = vpack.c.bf16 %v387_v40, %v1622_v0  ;;  %v404_v50 = vpop.permute.xlu1 %403 }
 0x13a   : >> { %v1003_v42 = vunpack.i.h.bf16 %v1001_v38  ;;  %v1002_v43 = vunpack.i.l.bf16 %v1001_v38 }
 0x13c   : >> { %823 = vmatpush1.bf16.msra.mxu0 %v822_v41  ;;  %v402_v46 = vsel %vm400_vm6, %v1003_v42, %v1002_v43  ;;  %v401_v49 = vsel %vm400_vm6, %v1002_v43, %v1003_v42 }
 0x13d   : >> { %825 = vmatprep.subr.bf16.mxu0 %v824_v39  ;;  %v828_v47 = vpack.c.bf16 %v402_v46, %v395_v44  ;;  %v406_v51 = vpop.permute.xlu0 %405  ;;  %v830_v52 = vpack.c.bf16 %v401_v49, %v394_v48 }
 0x13e   : >> { %v409_v53 = vsel %vm407_vm7, %v406_v51, %v404_v50  ;;  %v408_v54 = vsel %vm407_vm7, %v404_v50, %v406_v51 }
 0x140   : >> { %827 = vmatpush1.bf16.msra.mxu0 %v826_v45 }
 0x141   : >> { %829 = vmatprep.subr.bf16.mxu0 %v828_v47 }
 0x144   : >> { %831 = vmatpush1.bf16.msra.mxu0 %v830_v52 }
 0x145   : >> { %435 = vmatprep.subr.mxu0 %v409_v53 }
 0x148   : >> { %436 = vmatpush1.msra.mxu0 %v408_v54 }
 0x149   : >> { %801 = vmatmul.mubr.msk.f32.vlgmr.msra.gmra.mrb[0].mxu0 %vm415_vm8, %v343_v55 }
 0x14a   : >> { %v413_v58 = vpop.permute.xlu1 %412 }
 0x21c   : >> { %v485_v61 = vpop.f32.mrb[0].mxu0 }
 0x21d   : >> { %v486_v62 = vadd.f32 %v485_v61, %v413_v58  ;;  %v487_v0 = vpop.f32.mrb[1].mxu0 }
 0x21e   : >> { %v488_v1 = vadd.f32 %v487_v0, %v413_v58 }
 0x21f   : >> { %v490_v3 = vmax.f32 %v486_v62, 0.0 }
 0x220   : >> { %v491_v4 = vmax.f32 %v488_v1, 0.0 }
 0x221   : >> { %v503_v5 = vmul.f32 %v496_v63, %v490_v3 }
 0x222   : >> { %v504_v8 = vmul.f32 %v500_v2, %v491_v4 }
 0x224   : >> { %v1010_v9 = vpack.i.bf16 %v504_v8, %v503_v5 }
 0x226   : >> { %1011 = vrot.lane.b32.xlu1 %v1010_v9, %s1310_s25  ;;  %1006 = vrot.lane.b32.xlu0 %v1010_v9, %s1308_s29  ;;  %s639_s25 = scalar_lea.sflag (%p338_p7), [#allocation4], %s1589_s16 }
 0x22a   : >> { %1021 = vrot.lane.b32.xlu1 %v1010_v9, %s1309_s14  ;;  %1016 = vrot.lane.b32.xlu0 %v1010_v9, %s1307_s11  ;;  %s653_s11 = sshll.u32 (%p338_p7), %s1611_s28, 4  ;;  %s1741_s11 = int_to_ptr.vmem [resolvable:$true] %s653_s11 }
 0x22b   : > { %p1218_p3 = scmp.lt.s32.totalorder (%p338_p7), %s1741_s11, %s1216_s12 }
 0x22e   : >> { %1031 = vrot.lane.b32.xlu1 %v1010_v9, %s1312_s17  ;;  %1026 = vrot.lane.b32.xlu0 %v1010_v9, %s1311_s7  ;;  %s1211_s7 = scalar_lea.vmem (%p338_p7), %s1741_s11, 768 }
 0x22f   : > { %p1212_p10 = scmp.ne.s32.totalorder (%p338_p7), %s1741_s11, %s1211_s7  ;;  %p1219_p2 = scmp.lt.s32.totalorder (%p338_p7), %s1217_s27, %s1211_s7 }
 0x231   : > { %p1213_p13 = pnand (%p338_p7), %p1212_p10, %p1810_p12  ;;  %p1220_p8 = por (%p338_p7), %p1219_p2, %p1218_p3 }
 0x232   : >> { %547 = vrot.lane.b32.xlu1 %v503_v5, %s1314_s18  ;;  %1036 = vrot.lane.b32.xlu0 %v1010_v9, %s1313_s10 }
 0x233   : > { %p1214_p1 = pneg (%p338_p7), %p1213_p13 }
 0x235   : > { %p1221_p6 = pnand (%p338_p7), %p1220_p8, %p1214_p1 }
 0x236   : >> { %555 = vperm.xlu1 %1004, %v346_v6   ;;  %549 = vrot.lane.b32.xlu0 %v504_v8, %s1314_s18 }
 0x298   : >> { %v1012_v10 = vpop.permute.xlu1 %1011  ;;  %v1007_v11 = vpop.permute.xlu0 %1006 }
 0x299   : >> { %v1014_v12 = vunpack.i.h.bf16 %v1012_v10  ;;  %v1013_v13 = vunpack.i.l.bf16 %v1012_v10  ;;  %v1009_v14 = vunpack.i.h.bf16 %v1007_v11  ;;  %v1008_v15 = vunpack.i.l.bf16 %v1007_v11 }
 0x29b   : >> { %v509_v16 = vsel %vm358_vm0, %v1008_v15, %v1009_v14  ;;  %v515_v17 = vsel %vm365_vm1, %v1013_v13, %v1014_v12  ;;  %v510_v18 = vsel %vm358_vm0, %v1009_v14, %v1008_v15  ;;  %v516_v19 = vsel %vm365_vm1, %v1014_v12, %v1013_v13 }
 0x29c   : >> { %v1022_v20 = vpop.permute.xlu1 %1021  ;;  %v1017_v21 = vpop.permute.xlu0 %1016  ;;  %v832_v22 = vpack.c.bf16 %v515_v17, %v509_v16  ;;  %v834_v23 = vpack.c.bf16 %v516_v19, %v510_v18 }
 0x29d   : >> { %v1024_v24 = vunpack.i.h.bf16 %v1022_v20  ;;  %v1023_v25 = vunpack.i.l.bf16 %v1022_v20  ;;  %v1019_v26 = vunpack.i.h.bf16 %v1017_v21  ;;  %v1018_v27 = vunpack.i.l.bf16 %v1017_v21 }
 0x29e   : >> { %833 = vmatprep.subr.bf16.mxu1 %v832_v22 }
 0x29f   : >> { %835 = vmatpush1.bf16.msra.mxu1 %v834_v23  ;;  %v521_v28 = vsel %vm372_vm2, %v1018_v27, %v1019_v26  ;;  %v527_v29 = vsel %vm379_vm3, %v1023_v25, %v1024_v24  ;;  %v522_v30 = vsel %vm372_vm2, %v1019_v26, %v1018_v27  ;;  %v528_v31 = vsel %vm379_vm3, %v1024_v24, %v1023_v25 }
 0x2a0   : >> { %v1032_v32 = vpop.permute.xlu1 %1031  ;;  %v1027_v33 = vpop.permute.xlu0 %1026  ;;  %v836_v34 = vpack.c.bf16 %v527_v29, %v521_v28  ;;  %v838_v35 = vpack.c.bf16 %v528_v31, %v522_v30 }
 0x2a1   : >> { %v1029_v36 = vunpack.i.h.bf16 %v1027_v33  ;;  %v1028_v37 = vunpack.i.l.bf16 %v1027_v33  ;;  %v1034_v38 = vunpack.i.h.bf16 %v1032_v32  ;;  %v1033_v39 = vunpack.i.l.bf16 %v1032_v32 }
 0x2a2   : >> { %837 = vmatprep.subr.bf16.mxu1 %v836_v34 }
 0x2a3   : >> { %839 = vmatpush1.bf16.msra.mxu1 %v838_v35  ;;  %v534_v40 = vsel %vm386_vm4, %v1029_v36, %v1028_v37  ;;  %v533_v41 = vsel %vm386_vm4, %v1028_v37, %v1029_v36  ;;  %v540_v47 = vsel %vm393_vm5, %v1034_v38, %v1033_v39  ;;  %v539_v49 = vsel %vm393_vm5, %v1033_v39, %v1034_v38 }
 0x2a4   : >> { %v1037_v42 = vpop.permute.xlu0 %1036  ;;  %v840_v43 = vpack.c.bf16 %v534_v40, %v504_v8  ;;  %v842_v44 = vpack.c.bf16 %v533_v41, %v503_v5  ;;  %v548_v54 = vpop.permute.xlu1 %547 }
 0x2a5   : >> { %v1039_v45 = vunpack.i.h.bf16 %v1037_v42  ;;  %v1038_v46 = vunpack.i.l.bf16 %v1037_v42 }
 0x2a6   : >> { %841 = vmatprep.subr.bf16.mxu1 %v840_v43 }
 0x2a7   : >> { %843 = vmatpush1.bf16.msra.mxu1 %v842_v44  ;;  %v546_v48 = vsel %vm400_vm6, %v1039_v45, %v1038_v46  ;;  %v545_v50 = vsel %vm400_vm6, %v1038_v46, %v1039_v45 }
 0x2a8   : >> { %v550_v51 = vpop.permute.xlu0 %549  ;;  %v844_v52 = vpack.c.bf16 %v546_v48, %v540_v47  ;;  %v846_v53 = vpack.c.bf16 %v545_v50, %v539_v49 }
 0x2a9   : >> { %v552_v55 = vsel %vm407_vm7, %v550_v51, %v548_v54  ;;  %v551_v57 = vsel %vm407_vm7, %v548_v54, %v550_v51 }
 0x2aa   : >> { %845 = vmatprep.subr.bf16.mxu1 %v844_v52 }
 0x2ab   : >> { %847 = vmatpush1.bf16.msra.mxu1 %v846_v53 }
 0x2ac   : >> { %577 = vmatprep.subr.mxu1 %v552_v55 }
 0x2af   : >> { %578 = vmatpush1.msra.mxu1 %v551_v57 }
 0x2b0   : >> { %802 = vmatmul.mubr.msk.f32.vlgmr.msra.gmra.mrb[0].mxu1 %vm415_vm8, %v344_v56 }
 0x2b5   : >> { %v556_v58 = vpop.permute.xlu1 %555 }
 0x383   : >> { %v627_v59 = vpop.f32.mrb[0].mxu1  ;;  %340 = sbr.rel (!%p338_p7) target bundleno = 182 (0xb6), region = 118 }
 0x384   : >> { %v628_v60 = vadd.f32 %v627_v59, %v556_v58  ;;  %v629_v61 = vpop.f32.mrb[1].mxu1 }
 0x385   : >> { %v630_v62 = vadd.f32 %v629_v61, %v556_v58 }
 0x386   : >> { %v632_v63 = vmax.f32 %v628_v60, 0.0 }
 0x387   : >> { %v633_v0 = vmax.f32 %v630_v62, 0.0 }
 0x388   : >> { %636 = vst [vmem:[%s635_s19] sm:$0xff] %v632_v63 }
 0x389   : >> { %637 = vst [vmem:[%s635_s19 + $0x8] sm:$0xff] %v633_v0 }
 0x38a   : > { %1224 = shalt.err (!%p1221_p6)
}
 0x38b   : > { %s1225_s28 = scalar_lea.hbm %s1739_s15, 768  ;;  %s1229_s18 = scalar_lea.hbm %s1791_s6, 1536 }
 0x38c   : > { %p1226_p4 = scmp.ne.s32.totalorder %s1739_s15, %s1225_s28  ;;  %p1230_p5 = scmp.lt.u32.totalorder %s1739_s15, %s1791_s6 }
 0x38d   : > { %p1231_p9 = scmp.lt.u32.totalorder %s1229_s18, %s1225_s28  ;;  %p1233_p10 = scmp.lt.u32.totalorder %s1225_s28, %s1739_s15 }
 0x38e   : > { %p1227_p11 = pnand %p1226_p4, %p1810_p12 }
 0x38f   : > { %p1232_p7 = por %p1231_p9, %p1230_p5 }
 0x390   : > { %p1228_p0 = pneg %p1227_p11 }
 0x391   : > { %p1234_p13 = por %p1233_p10, %p1232_p7 }
 0x393   : > { %p1235_p1 = pnand %p1234_p13, %p1228_p0 }
 0x395   : > { %1238 = shalt.err (!%p1235_p1)
}
 0x396   : > { %s1318_s29 = smov 256   ;;  %s1319_s14 = smov 16  }
 0x397   : > { %872 = dma.vmem_to_hbm [thread:$0]  (%p1810_p12), %s1741_s11, 768, %s1739_s15, %s639_s25, %s1318_s29, %s1318_s29, %s1319_s14  }
 0x398 PF: > { %s668_s7 = sand.u32 1, %s1281_s21   ;;  %p1811_p3 = scmp.ne.s32.totalorder %s1801_s30, 0 }
 0x399   : > { %p1812_p2 = scmp.ge.s32.totalorder %s1293_s24, 2  ;;  %s669_s13 = scalar_lea.sflag [#allocation4], %s668_s7 }
 0x39b   : > { %p895_p8 = pnand %p1812_p2, %p1811_p3 }
 0x39d   : > { %1276 = dma.done.wait (!%p895_p8), %s669_s13, 768  }
 0x39e   : > { %1278 = vsyncadd (!%p895_p8), %s669_s13, 4294966528  ;;  %p22_p6 = scmp.ge.s32.totalorder %s1516_s9, 4   ;;  %s1813_s21 = smov %s1285_s22 }
 0x39f   : > { %s1814_s22 = smov %s1289_s23  ;;  %s1815_s23 = smov %s1528_s8 }
 0x3a0   : > { %s1816_s24 = smov %s1516_s9  ;;  %24 = sbr.rel (!%p22_p6) target bundleno = 8 (0x8), region = 129 }
 0x3a7   :  { %674 = vsyncpa [#allocation3], 1 }
 0x3a8   :  { %676 = vsyncpa [#allocation3 + $0x1], 1 }
 0x3a9   :  { %677 = vsyncpa [#allocation6], 1 }
 0x3aa   :  { %678 = vsyncpa [#allocation9], 1 }
 0x3ab   :  { %679 = vsyncpa [#allocation12], 1 }
 0x3ac   :  { %680 = vsyncpa [#allocation4], 1 }
 0x3ad   :  { %682 = vsyncpa [#allocation4 + $0x1], 1 }

</bundles_post_ra>
